<compile_context>
chip_gen: v7x
topology: tpu7x:2x2x1
jax: 0.10.0
libtpu: 0.0.40
codegen_flags: <defaults>
</compile_context>

<pallas_src>
import jax
import jax.numpy as jnp
from jax.experimental import pallas as pl
from jax.experimental.pallas import tpu as pltpu


def _linear_bias_kernel(x_ref, w_ref, b_ref, o_ref):
    # x_ref : (B, E)    bf16 -- full (tiny) batch of activations, resident every step
    # w_ref : (E, tn)   bf16 -- one contiguous pre-tiled column block of W^T
    # b_ref : (1, tn)   f32  -- matching bias slice (fused epilogue)
    # o_ref : (B, tn)   f32
    o_ref[...] = (
        jnp.dot(x_ref[...], w_ref[...], preferred_element_type=jnp.float32)
        + b_ref[...]
    )


def _choose_tn(n, e, w_bytes=2, max_tile_bytes=8 << 20, min_steps=4):
    """Pick the output-column tile width tn (multiple of 128).

    Bounded so (a) a double-buffered (E, tn) weight tile stays <= ~2*8 MiB in
    VMEM on every generation (v7x has only 64 MiB/TC physical), and (b) the
    grid has >= min_steps steps so the parallel grid axis keeps both v7x
    TensorCores busy.  n need NOT be divisible by tn: callers pad N to T*tn.
    """
    cap_bytes = max(128, (max_tile_bytes // (e * w_bytes)) // 128 * 128)
    cap_steps = max(128, ((pl.cdiv(n, min_steps) + 127) // 128) * 128)
    return min(cap_bytes, cap_steps)


def decoder1d_fc(code, w_tiled, bias2d, n_out):
    """code: (B, E) f32; w_tiled: (T, E, tn) bf16; bias2d: (1, T*tn) f32.

    Computes y = code @ W^T + b  -> (B, n_out) f32, streaming the pre-tiled
    bf16 weight through VMEM one (E, tn) block per grid step with the bias add
    fused in-kernel.
    """
    B, E = code.shape
    T, e_w, tn = w_tiled.shape
    assert e_w == E, (e_w, E)
    n_pad = T * tn

    x = code.astype(jnp.bfloat16)

    y = pl.pallas_call(
        _linear_bias_kernel,
        out_shape=jax.ShapeDtypeStruct((B, n_pad), jnp.float32),
        grid_spec=pltpu.PrefetchScalarGridSpec(
            num_scalar_prefetch=0,
            grid=(T,),
            in_specs=[
                # whole activations, resident every step (block == full array)
                pl.BlockSpec((B, E), lambda j: (0, 0)),
                # one contiguous weight tile; leading tile axis squeezed away
                pl.BlockSpec((None, E, tn), lambda j: (j, 0, 0)),
                # matching bias slice for the fused epilogue
                pl.BlockSpec((1, tn), lambda j: (0, j)),
            ],
            out_specs=pl.BlockSpec((B, tn), lambda j: (0, j)),
        ),
        compiler_params=pltpu.CompilerParams(
            dimension_semantics=("parallel",),
            vmem_limit_bytes=32 * 1024 * 1024,
        ),
    )(x, w_tiled, bias2d)

    if n_pad != n_out:
        y = y[:, :n_out]
    return y


class Decoder1D:
    """JAX/Pallas port of the PyTorch Decoder1D (decodeFC + view)."""

    def __init__(self, encode_dim=50, region_height=1000, key=None):
        self.encode_dim = encode_dim
        self.reads_height = region_height
        out_dim = 256 * region_height
        self.out_dim = out_dim

        if key is None:
            key = jax.random.PRNGKey(0)
        kw, kb = jax.random.split(key)
        # Deterministic synthetic init (PyTorch Linear default is U(-s, s), s=1/sqrt(fan_in)).
        s = 1.0 / jnp.sqrt(jnp.float32(encode_dim))
        # Weight stored already transposed: (encode_dim, 256*H), f32 master copy.
        w_t = jax.random.uniform(kw, (encode_dim, out_dim), jnp.float32, -s, s)
        self.b = jax.random.uniform(kb, (out_dim,), jnp.float32, -s, s)

        # Host-side pre-tiling: NO K padding in HBM (E = encode_dim exactly);
        # pad only the output-column count so tn can be chosen freely, then
        # reshape into (T, E, tn) contiguous tiles and cast to bf16.
        self.tn = _choose_tn(out_dim, encode_dim)
        self.t = pl.cdiv(out_dim, self.tn)
        self.n_pad = self.t * self.tn

        w_pad = jnp.pad(w_t, ((0, 0), (0, self.n_pad - out_dim)))
        self.w_tiled = (
            w_pad.reshape(encode_dim, self.t, self.tn)
            .transpose(1, 0, 2)              # (T, E, tn)
            .astype(jnp.bfloat16)
        )
        self.bias2d = jnp.pad(self.b, (0, self.n_pad - out_dim)).reshape(1, self.n_pad)

    def dequant_weight(self):
        """(encode_dim, 256*H) f32 view of the stored bf16 weight (for checks).

        Correct for any T: (T, E, tn) -> (E, T, tn) -> (E, T*tn) -> drop padding.
        """
        w = self.w_tiled.astype(jnp.float32).transpose(1, 0, 2)
        w = w.reshape(self.encode_dim, self.n_pad)
        return w[:, : self.out_dim]

    def __call__(self, code):
        B = code.shape[0]
        x = decoder1d_fc(code, self.w_tiled, self.bias2d, self.out_dim)  # (B, 256*H)
        x = x.reshape(B, 256, self.reads_height, 1)                      # matches x.view(...)
        # TODO(synk): self.deresnet (deconvresnet18_1d) definition not provided; skipped.
        return x


if __name__ == "__main__":
    # Small shapes consistent with the module: encode_dim=50 (module default),
    # region_height=8, batch=2.  out_dim=2048 -> tn=512, T=4, so the multi-tile
    # grid path and the unpadded K=50 contraction are both exercised.
    B, ENCODE_DIM, REGION_HEIGHT = 2, 50, 8

    key = jax.random.PRNGKey(0)
    k_in, k_param = jax.random.split(key)
    code = jax.random.normal(k_in, (B, ENCODE_DIM), jnp.float32)

    model = Decoder1D(encode_dim=ENCODE_DIM, region_height=REGION_HEIGHT, key=k_param)
    assert model.t >= 4, model.t  # multi-tile grid path is actually tested

    out = model(code)
    out = jax.block_until_ready(out)

    # Cross-check the Pallas FC against a plain-JAX reference using the same
    # bf16-quantized operands (f32 accumulate), matching the kernel's math.
    code_q = code.astype(jnp.bfloat16).astype(jnp.float32)
    w_q = model.dequant_weight()
    ref = (code_q @ w_q + model.b).reshape(B, 256, REGION_HEIGHT, 1)

    assert out.shape == (B, 256, REGION_HEIGHT, 1), out.shape
    assert jnp.allclose(out, ref, atol=1e-3, rtol=1e-3), "mismatch vs reference"

    print("KERNEL_OK")
</pallas_src>

<mosaic_0001>
module attributes {stable_mosaic.version = 11 : i64} {
  func.func @_linear_bias_kernel(%arg0: i32, %arg1: memref<2x50xbf16, #tpu.memory_space<vmem>>, %arg2: memref<1x50x512xbf16, #tpu.memory_space<vmem>>, %arg3: memref<1x512xf32, #tpu.memory_space<vmem>>, %arg4: memref<2x512xf32, #tpu.memory_space<vmem>>) attributes {dimension_semantics = [#tpu.dimension_semantics<parallel>], iteration_bounds = array<i64: 4>, scalar_prefetch = 0 : i64, scratch_operands = 0 : i64, tpu.core_type = #tpu.core_type<tc>, window_params = [{pipeline_mode = #tpu.pipeline_mode<synchronous>, transform_indices = @transform_0, window_bounds = array<i64: 2, 50>}, {transform_indices = @transform_1, window_bounds = array<i64: 1, 50, 512>}, {transform_indices = @transform_2, window_bounds = array<i64: 1, 512>}, {transform_indices = @transform_3, window_bounds = array<i64: 2, 512>}]} {
    %c0 = arith.constant 0 : index
    %c0_0 = arith.constant 0 : index
    %0 = vector.load %arg1[%c0, %c0_0] : memref<2x50xbf16, #tpu.memory_space<vmem>>, vector<2x50xbf16>
    %c0_1 = arith.constant 0 : index
    %c0_2 = arith.constant 0 : index
    %c0_3 = arith.constant 0 : index
    %1 = vector.load %arg2[%c0_1, %c0_2, %c0_3] : memref<1x50x512xbf16, #tpu.memory_space<vmem>>, vector<1x50x512xbf16>
    %2 = vector.shape_cast %1 : vector<1x50x512xbf16> to vector<50x512xbf16>
    %cst = arith.constant dense<0.000000e+00> : vector<2x512xf32>
    %3 = tpu.matmul %0, %2, %cst {dimension_numbers = #tpu.dot_dimension_numbers<[1], [0], [0], [1], [0, 0, 1, 1], [], []>} : vector<2x50xbf16>, vector<50x512xbf16>, vector<2x512xf32> -> vector<2x512xf32>
    %c0_4 = arith.constant 0 : index
    %c0_5 = arith.constant 0 : index
    %4 = vector.load %arg3[%c0_4, %c0_5] : memref<1x512xf32, #tpu.memory_space<vmem>>, vector<1x512xf32>
    %5 = vector.broadcast %4 : vector<1x512xf32> to vector<2x512xf32>
    %6 = arith.addf %3, %5 : vector<2x512xf32>
    %c0_6 = arith.constant 0 : index
    %c0_7 = arith.constant 0 : index
    %7 = vector.load %arg4[%c0_6, %c0_7] : memref<2x512xf32, #tpu.memory_space<vmem>>, vector<2x512xf32>
    tpu.vector_store %arg4[%c0_6, %c0_7], %6 {strides = array<i32>} : memref<2x512xf32, #tpu.memory_space<vmem>>, vector<2x512xf32>,
    return
  }
  func.func @transform_0(%arg0: i32) -> (i32, i32) {
    %c0_i32 = arith.constant 0 : i32
    %c0_i32_0 = arith.constant 0 : i32
    %c0_i32_1 = arith.constant 0 : i32
    return %c0_i32, %c0_i32_0 : i32, i32
  }
  func.func @transform_1(%arg0: i32) -> (i32, i32, i32) {
    %c0_i32 = arith.constant 0 : i32
    %c0_i32_0 = arith.constant 0 : i32
    %c0_i32_1 = arith.constant 0 : i32
    return %arg0, %c0_i32, %c0_i32_0 : i32, i32, i32
  }
  func.func @transform_2(%arg0: i32) -> (i32, i32) {
    %c0_i32 = arith.constant 0 : i32
    %c0_i32_0 = arith.constant 0 : i32
    return %c0_i32, %arg0 : i32, i32
  }
  func.func @transform_3(%arg0: i32) -> (i32, i32) {
    %c0_i32 = arith.constant 0 : i32
    %c0_i32_0 = arith.constant 0 : i32
    return %c0_i32, %arg0 : i32, i32
  }
}

</mosaic_0001>

<bundles_post_ra>
// kernel: tpu_custom_call.1
= control target key start
LH: loop header
LB: loop body
LE: loop exit
PB: predicated region body
PF: predicated region fallthrough
CT: control target
= control target key end

     0   :  { %8 = vsyncpa [#allocation3], 0  ;;  %s797_s0 = inlined_call_operand.vmem [shape: bf16[2,50], index: 0, kind: input, shape index: {}]   ;;  %s798_s1 = inlined_call_operand.vmem [shape: bf16[4,50,512], index: 1, kind: input, shape index: {}]   ;;  %s799_s2 = inlined_call_operand.vmem [shape: f32[1,2048], index: 2, kind: input, shape index: {}]   ;;  %s800_s3 = inlined_call_operand.hbm [shape: f32[2,2048], index: 3, kind: output, shape index: {}]  }
   0x1   :  { %10 = vsyncpa [#allocation3 + $0x1], 0  ;;  %s686_s12 = smov 0   ;;  %s688_s13 = smov 0  }
   0x2   :  { %s690_s14 = smov 0   ;;  %s692_s15 = smov 0  }
   0x3 LB: > { %s707_s16 = sadd.s32 4294967295, %s661_s15   ;;  %s502_s17 = sadd.s32 4294967294, %s661_s15   ;;  %s661_s15 = sphi %s692_s15, %s806_s15   ;;  %s657_s14 = sphi %s690_s14, %s805_s14   ;;  %s653_s13 = sphi %s688_s13, %s804_s13   ;;  %s649_s12 = sphi %s686_s12, %s803_s12  }
   0x4   : > { %s711_s18 = sadd.s32 1, %s661_s15   ;;  %s96_s19 = sadd.s32 1, %s657_s14 }
   0x5   : > { %s93_s20 = ssub.s32 %s661_s15, %s711_s18  ;;  %p106_p0 = scmp.ne.s32.totalorder %s657_s14, %s653_s13 }
   0x6   : > { %p94_p1 = scmp.eq.s32.totalorder %s93_s20, 0  ;;  %p107_p2 = scmp.eq.s32.totalorder %s707_s16, 3 }
   0x7   : > { %p112_p3 = scmp.ne.s32.totalorder %s653_s13, %s649_s12  ;;  %p113_p4 = scmp.eq.s32.totalorder %s502_s17, 3 }
   0x8   : > { %s722_s21 = scalar_select %p94_p1, %s657_s14, %s96_s19  }
   0x9   : > { %p724_p5 = por %p107_p2, %p106_p0  ;;  %p728_p6 = por %p113_p4, %p112_p3 }
   0xa   : > { %p505_p7 = scmp.ge.s32.totalorder %s661_s15, 1  ;;  %p150_p8 = scmp.lt.s32.totalorder %s661_s15, 5 }
   0xc   : > { %p151_p9 = pnand %p505_p7, %p150_p8 }
   0xd   : > { %p178_p10 = scmp.lt.s32.totalorder (!%p151_p9), %s707_s16, 3  ;;  %v663_v0 = vmov (!%p151_p9), 0   ;;  %vm301_vm0 = vcmask (!%p151_p9), 1040384   ;;  %v190_v21 = vld [vmem:[%s797_s0] sm:$0x1] (!%p151_p9)  ;;  %vm297_vm1 = vcmask (!%p151_p9), 408576   ;;  %v207_v22 = vlaneseq (!%p151_p9) }
   0xe   : > { %154 = sbr.rel (%p151_p9) target bundleno = 278 (0x116), region = 32  ;;  %346 = vmatprep.mubr.bf16.mxu0 (!%p151_p9), %v663_v0  ;;  %387 = vmatprep.mubr.bf16.mxu1 (!%p151_p9), %v663_v0  ;;  %s508_s4 = sshll.u32 (!%p151_p9), %s707_s16, 2  ;;  %v664_v28 = vmov (!%p151_p9), 1983009808  }
   0xf   : > { %p184_p11 = scmp.lt.s32.totalorder (!%p151_p9), %s508_s4, 15  ;;  %v208_v23 = vshrl.u32 (!%p151_p9), %v207_v22, 7  ;;  %v403_v29 = vunpack.c.l.s4 (!%p151_p9), %v664_v28  ;;  %s175_s8 = sand.u32 (!%p151_p9), 1, %s653_s13  }
  0x10   : > { %s506_s9 = sshll.u32 (!%p151_p9), %s175_s8, 3  ;;  %s534_s10 = sshll.u32 (!%p151_p9), %s707_s16, 7 }
  0x11   : > { %v209_v24 = vsub.s32 (!%p151_p9), 0, %v208_v23  ;;  %v217_v25 = vsub.s32 (!%p151_p9), 2, %v208_v23  ;;  %v213_v27 = vsub.s32 (!%p151_p9), 1, %v208_v23  ;;  %v221_v30 = vsub.s32 (!%p151_p9), 3, %v208_v23  ;;  %s177_s11 = scalar_lea.vmem (!%p151_p9), [#allocation2], %s506_s9 }
  0x12   : > { %v404_v34 = vunpack.c.0.s8 (!%p151_p9), %v403_v29  ;;  %s434_s17 = sshll.u32 (!%p151_p9), %s177_s11, 4  ;;  %s755_s17 = int_to_ptr.vmem [resolvable:$true] %s434_s17 }
  0x13   : > { %s599_s26 = scalar_lea.vmem (!%p151_p9), %s755_s17, 128 }
  0x14   : > { %v407_v43 = vsub.s32 (!%p151_p9), %v404_v34, %v208_v23  ;;  %p600_p12 = scmp.ne.s32.totalorder (!%p151_p9), %s755_s17, %s599_s26 }
  0x15   : > { %s179_s24 = scalar_select %p178_p10, %s707_s16, 3 }
  0x16   : > { %s808_s4 = smov (!%p184_p11, %s508_s4), 15  ;;  %p601_p13 = pnand %p600_p12, %p724_p5 }
  0x17   : > { %s535_s25 = smul.u32 112, %s179_s24  ;;  %s186_s7 = scalar_lea.vmem %s799_s2, %s808_s4 }
  0x18   : > { %v205_v26 = vld [vmem:[%s186_s7] sm:$0xf]  ;;  %s753_s24 = scalar_lea.hbm %s800_s3, %s534_s10  ;;  %p602_p0 = pneg %p601_p13 }
  0x19   : > { %s182_s28 = scalar_lea.vmem %s798_s1, %s535_s25  ;;  %v210_v31 = vrot.slane %v205_v26, %v209_v24  ;;  %v218_v32 = vrot.slane %v205_v26, %v217_v25  ;;  %v214_v33 = vrot.slane %v205_v26, %v213_v27  ;;  %v222_v35 = vrot.slane %v205_v26, %v221_v30  ;;  %s420_s25 = scalar_lea.sflag [#allocation3], %s175_s8 }
  0x1a   : > { %v577_v1 = vld [vmem:[%s182_s28 + $0x4] ss:$16 sps:$4 sm:$0xff]   ;;  %v579_v2 = vld [vmem:[%s182_s28 + $0xc] ss:$16 sps:$4 sm:$0xff]   ;;  %v581_v3 = vld [vmem:[%s182_s28] ss:$16 sps:$4 sm:$0xff]  }
  0x1b   : > { %314 = vmatprep.subr.bf16.mxu0 %v577_v1  ;;  %v582_v4 = vld [vmem:[%s182_s28 + $0x8] ss:$16 sps:$4 sm:$0xff]   ;;  %355 = vmatprep.subr.bf16.mxu1 %v579_v2  ;;  %v583_v5 = vld [vmem:[%s182_s28 + $0x24] ss:$16 sps:$4 sm:$0xff]   ;;  %v585_v6 = vld [vmem:[%s182_s28 + $0x2c] ss:$16 sps:$4 sm:$0xff]  }
  0x1c   : > { %315 = vmatpush1.bf16.msra.mxu0 %v581_v3  ;;  %356 = vmatpush1.bf16.msra.mxu1 %v582_v4  ;;  %v587_v7 = vld [vmem:[%s182_s28 + $0x20] ss:$16 sps:$4 sm:$0xff]   ;;  %v588_v8 = vld [vmem:[%s182_s28 + $0x28] ss:$16 sps:$4 sm:$0xff]   ;;  %v589_v9 = vld [vmem:[%s182_s28 + $0x44] ss:$16 sps:$4 sm:$0xff]  }
  0x1d   : > { %316 = vmatprep.subr.bf16.mxu0 %v583_v5  ;;  %357 = vmatprep.subr.bf16.mxu1 %v585_v6  ;;  %v591_v10 = vld [vmem:[%s182_s28 + $0x4c] ss:$16 sps:$4 sm:$0xff]   ;;  %v593_v11 = vld [vmem:[%s182_s28 + $0x40] ss:$16 sps:$4 sm:$0xff]   ;;  %v594_v12 = vld [vmem:[%s182_s28 + $0x48] ss:$16 sps:$4 sm:$0xff]  }
  0x1e   : > { %v203_v13 = vld [vmem:[%s182_s28 + $0x60] sm:$0x11]  ;;  %v204_v14 = vld [vmem:[%s182_s28 + $0x68] sm:$0x11]  ;;  %s665_s16 = smov [#allocation2]  }
  0x1f   : > { %v522_v15 = vcombine.high %v203_v13, %v203_v13  ;;  %v524_v16 = vcombine.high %v204_v14, %v204_v14  ;;  %v521_v17 = vcombine.low %v203_v13, %v203_v13  ;;  %v523_v18 = vcombine.low %v204_v14, %v204_v14  ;;  %s603_s27 = sshll.u32 %s665_s16, 4  ;;  %s604_s27 = int_to_ptr.vmem [resolvable:$false] %s603_s27 }
  0x20   : > { %317 = vmatpush1.bf16.msra.mxu0 %v587_v7  ;;  %358 = vmatpush1.bf16.msra.mxu1 %v588_v8  ;;  %s605_s28 = scalar_lea.vmem %s604_s27, 256  ;;  %p606_p1 = scmp.lt.s32.totalorder %s755_s17, %s604_s27 }
  0x21   : > { %318 = vmatprep.subr.bf16.mxu0 %v589_v9  ;;  %359 = vmatprep.subr.bf16.mxu1 %v591_v10  ;;  %v303_v19 = vsel %vm301_vm0, %v521_v17, 0  ;;  %v309_v20 = vsel %vm301_vm0, %v523_v18, 0  ;;  %p607_p2 = scmp.lt.s32.totalorder %s605_s28, %s599_s26 }
  0x23   : > { %p608_p3 = por %p607_p2, %p606_p1 }
  0x24   : > { %319 = vmatpush1.bf16.msra.mxu0 %v593_v11  ;;  %360 = vmatpush1.bf16.msra.mxu1 %v594_v12 }
  0x25   : > { %525 = vmatprep.subr.msk.bf16.mxu0 %vm301_vm0, %v522_v15  ;;  %527 = vmatprep.subr.msk.bf16.mxu1 %vm301_vm0, %v524_v16  ;;  %p609_p4 = pnand %p608_p3, %p602_p0 }
  0x28   : > { %321 = vmatpush1.bf16.msra.mxu0 %v303_v19  ;;  %362 = vmatpush1.bf16.msra.mxu1 %v309_v20 }
  0x2b   : > { %526 = vmatmul.mubr.msk.bf16.vlgmr.msra.gmra.mrb[0].mxu0 %vm297_vm1, %v190_v21  ;;  %528 = vmatmul.mubr.msk.bf16.vlgmr.msra.gmra.mrb[0].mxu1 %vm297_vm1, %v190_v21 }
  0xfe   : > { %v348_v36 = vpop.f32.mrb[0].mxu0  ;;  %v389_v37 = vpop.f32.mrb[0].mxu1 }
  0xff   : > { %v349_v38 = vadd.f32 %v348_v36, %v210_v31  ;;  %v390_v39 = vadd.f32 %v389_v37, %v218_v32  ;;  %v350_v40 = vpop.f32.mrb[1].mxu0  ;;  %v391_v41 = vpop.f32.mrb[1].mxu1 }
 0x100   : > { %v351_v42 = vadd.f32 %v350_v40, %v214_v33  ;;  %v392_v44 = vadd.f32 %v391_v41, %v222_v35  ;;  %v352_v45 = vpop.f32.mrb[2].mxu0  ;;  %v393_v46 = vpop.f32.mrb[2].mxu1 }
 0x101   : > { %v353_v47 = vpop.f32.mrb[3].mxu0  ;;  %v394_v48 = vpop.f32.mrb[3].mxu1 }
 0x102   : > { %v400_v49 = vcombine.low %v349_v38, %v351_v42  ;;  %v401_v50 = vcombine.low %v390_v39, %v392_v44 }
 0x104   : > { %v408_v51 = vrot.slane %v400_v49, %v407_v43  ;;  %v415_v52 = vrot.slane %v401_v50, %v407_v43 }
 0x106   : > { %v416_v53 = vcombine.low %v408_v51, %v415_v52 }
 0x108   : > { %418 = vst [vmem:[%s177_s11] sm:$0xff] %v416_v53 }
 0x109   : > { %612 = shalt.err (!%p609_p4)
}
 0x10a   : > { %s613_s29 = scalar_lea.hbm %s753_s24, 128  ;;  %s617_s5 = scalar_lea.hbm %s800_s3, 512 }
 0x10b   : > { %p614_p7 = scmp.ne.s32.totalorder %s753_s24, %s613_s29  ;;  %p618_p10 = scmp.lt.u32.totalorder %s753_s24, %s800_s3 }
 0x10c   : > { %p619_p11 = scmp.lt.u32.totalorder %s617_s5, %s613_s29  ;;  %p621_p13 = scmp.lt.u32.totalorder %s613_s29, %s753_s24 }
 0x10d   : > { %p615_p8 = pnand %p614_p7, %p724_p5 }
 0x10e   : > { %p620_p12 = por %p619_p11, %p618_p10 }
 0x10f   : > { %p616_p9 = pneg %p615_p8 }
 0x110   : > { %p622_p0 = por %p621_p13, %p620_p12 }
 0x112   : > { %p623_p1 = pnand %p622_p0, %p616_p9 }
 0x114   : > { %626 = shalt.err (!%p623_p1)
}
 0x115   : > { %536 = dma.vmem_to_hbm [thread:$0]  (%p724_p5), %s755_s17, 128, %s753_s24, %s420_s25  }
 0x116 PF: > { %p542_p2 = scmp.ge.s32.totalorder %s661_s15, 2  ;;  %s446_s8 = sand.u32 1, %s649_s12  }
 0x117   : > { %s447_s9 = scalar_lea.sflag [#allocation3], %s446_s8 }
 0x118   : > { %p539_p3 = pnand %p542_p2, %p728_p6 }
 0x11a   : > { %644 = dma.done.wait (!%p539_p3), %s447_s9, 128  }
 0x11b   : > { %646 = vsyncadd (!%p539_p3), %s447_s9, 4294967168  ;;  %p13_p4 = scmp.ge.s32.totalorder %s711_s18, 6   ;;  %s803_s12 = smov %s653_s13 }
 0x11c   : > { %s804_s13 = smov %s657_s14  ;;  %s805_s14 = smov %s722_s21 }
 0x11d   : > { %s806_s15 = smov %s711_s18  ;;  %15 = sbr.rel (!%p13_p4) target bundleno = 3 (0x3), region = 70 }
 0x124   :  { %452 = vsyncpa [#allocation3], 1 }
 0x125   :  { %454 = vsyncpa [#allocation3 + $0x1], 1 }

</bundles_post_ra>
